<compile_context>
chip_gen: v5e
topology: v5e:2x2
jax: 0.10.0
libtpu: 0.0.40
codegen_flags: <defaults>
</compile_context>

<pallas_src>
import math
import functools
from typing import NamedTuple, Optional

import jax
import jax.numpy as jnp
from jax.experimental import pallas as pl
from jax.experimental.pallas import tpu as pltpu


def _round_up(x, m):
    return (x + m - 1) // m * m


# Whole-K single-tile threshold: x tile 128x2048 f32 = 1 MiB, W tile
# 2048x512 f32 = 4 MiB -> ~10.5 MiB double-buffered, fits v7x 32 MiB scoped VMEM.
_MAX_SINGLE_K = 2048


# ----------------------------- kernels --------------------------------------


def _epilogue(acc, b_ref, *, scale, lr_mul, activation, out_dtype):
    if activation:
        # scale > 0 => leaky_relu(scale*z) == scale*leaky_relu(z); fold scale
        # and the hard-coded 1.4 gain into one constant multiplier.
        out = jnp.where(acc >= 0.0, acc, 0.2 * acc) * (scale * 1.4)
    else:
        out = acc * scale + b_ref[...].astype(jnp.float32) * lr_mul
    return out.astype(out_dtype)


def _kernel_single_k(*refs, scale, lr_mul, activation):
    """Whole-K: one MXU dot + fused epilogue, no accumulator scratch.

    activation path refs: (x_ref(tm,K), w_ref(K,tn), o_ref(tm,tn))
    bias       path refs: (x_ref, w_ref, b_ref(1,tn), o_ref)
    """
    if activation:
        x_ref, w_ref, o_ref = refs
        b_ref = None
    else:
        x_ref, w_ref, b_ref, o_ref = refs
    acc = jnp.dot(x_ref[...], w_ref[...], preferred_element_type=jnp.float32)
    o_ref[...] = _epilogue(acc, b_ref, scale=scale, lr_mul=lr_mul,
                           activation=activation, out_dtype=o_ref.dtype)


def _kernel_multi_k(*refs, scale, lr_mul, activation):
    """K-tiled fallback for very large in_dim (reduction axis last in grid)."""
    if activation:
        x_ref, w_ref, o_ref, acc_ref = refs
        b_ref = None
    else:
        x_ref, w_ref, b_ref, o_ref, acc_ref = refs

    k = pl.program_id(2)

    @pl.when(k == 0)
    def _init():
        acc_ref[...] = jnp.zeros_like(acc_ref)

    acc_ref[...] += jnp.dot(x_ref[...], w_ref[...],
                            preferred_element_type=jnp.float32)

    @pl.when(k == pl.num_programs(2) - 1)
    def _finalize():
        o_ref[...] = _epilogue(acc_ref[...], b_ref, scale=scale, lr_mul=lr_mul,
                               activation=activation, out_dtype=o_ref.dtype)


# ----------------------- parameter preparation ------------------------------


class EqualLinearParams(NamedTuple):
    w_kn: jax.Array                 # (Kp, Np) padded, (K,N)-major weight
    b_pad: Optional[jax.Array]      # (1, Np) padded bias (None on activation path)
    in_dim: int
    out_dim: int
    Kp: int
    Np: int
    tn: int
    tk: int
    scale: float
    lr_mul: float
    activation: bool


def _pick_tn(Np):
    """Largest 128-multiple tile <= 512 dividing Np, keeping >= 2 N blocks
    when possible so both v7x TensorCores get work at small batch."""
    if Np <= 128:
        return Np
    for cand in (512, 384, 256, 128):
        if cand <= Np // 2 and Np % cand == 0:
            return cand
    return 128


def _pick_tk(in_dim):
    """Reduction tile for in_dim > _MAX_SINGLE_K: minimise padded K (wasted W
    bandwidth), tie-break towards the largest tile (fewest grid steps)."""
    best = None
    for mult in (16, 12, 8, 6, 4, 3, 2, 1):
        tk = mult * 128
        Kp = _round_up(in_dim, tk)
        if best is None or Kp < best[0]:
            best = (Kp, tk)
    return best[1], best[0]


def prepare_equal_linear(weight, bias=None, *, lr_mul=1.0, activation=None):
    """One-time (per parameter set) prep: pad + transpose W to (K, N)-major.

    weight: (out_dim, in_dim) raw parameter (already divided by lr_mul at init)
    bias:   (out_dim,) or None (required when activation is None)
    """
    out_dim, in_dim = weight.shape
    scale = (1.0 / math.sqrt(in_dim)) * lr_mul

    Np = _round_up(out_dim, 128)
    tn = _pick_tn(Np)

    if in_dim <= _MAX_SINGLE_K:
        Kp = _round_up(in_dim, 128)
        tk = Kp                       # whole-K: single step, no accumulator
    else:
        tk, Kp = _pick_tk(in_dim)

    # One-time pad + transpose: lane-dense in N, matches the (tm,tk)x(tk,tn)
    # MXU contraction with no per-tile transposes.  Padded K rows are zero and
    # contribute nothing to the matmul.
    w_kn = jnp.zeros((Kp, Np), weight.dtype).at[:in_dim, :out_dim].set(weight.T)

    if activation:
        b_pad = None                  # spec: activation branch applies no bias
    else:
        assert bias is not None, "module was constructed with bias=True"
        b_pad = jnp.zeros((1, Np), bias.dtype).at[0, :out_dim].set(bias)

    return EqualLinearParams(w_kn, b_pad, int(in_dim), int(out_dim), int(Kp),
                             int(Np), int(tn), int(tk), float(scale),
                             float(lr_mul), bool(activation))


# ------------------------------ forward -------------------------------------


def equal_linear_apply(params: EqualLinearParams, x):
    """Forward pass: x (B, in_dim) -> (B, out_dim)."""
    B, in_dim = x.shape
    assert in_dim == params.in_dim
    Kp, Np, tn, tk = params.Kp, params.Np, params.tn, params.tk

    # Small batch: keep tm minimal (W-bandwidth-bound; padding M is pure waste).
    tm = min(_round_up(B, 8), 128)
    Bp = _round_up(B, tm)

    xp = x
    if (Bp, Kp) != (B, in_dim):
        xp = jnp.zeros((Bp, Kp), x.dtype).at[:B, :in_dim].set(x)

    single_k = (tk == Kp)
    if single_k:
        grid = (Bp // tm, Np // tn)
        in_specs = [
            pl.BlockSpec((tm, Kp), lambda i, j: (i, 0)),    # x (resident over j)
            pl.BlockSpec((Kp, tn), lambda i, j: (0, j)),    # W (streamed over j)
        ]
        if not params.activation:
            in_specs.append(pl.BlockSpec((1, tn), lambda i, j: (0, j)))
        out_specs = pl.BlockSpec((tm, tn), lambda i, j: (i, j))
        scratch = []
        kernel = functools.partial(_kernel_single_k, scale=params.scale,
                                   lr_mul=params.lr_mul,
                                   activation=params.activation)
        dims = ("parallel", "parallel")
    else:
        grid = (Bp // tm, Np // tn, Kp // tk)               # reduction axis last
        in_specs = [
            pl.BlockSpec((tm, tk), lambda i, j, k: (i, k)),
            pl.BlockSpec((tk, tn), lambda i, j, k: (k, j)),
        ]
        if not params.activation:
            in_specs.append(pl.BlockSpec((1, tn), lambda i, j, k: (0, j)))
        out_specs = pl.BlockSpec((tm, tn), lambda i, j, k: (i, j))
        scratch = [pltpu.VMEM((tm, tn), jnp.float32)]
        kernel = functools.partial(_kernel_multi_k, scale=params.scale,
                                   lr_mul=params.lr_mul,
                                   activation=params.activation)
        dims = ("parallel", "parallel", "arbitrary")

    args = [xp, params.w_kn]
    if not params.activation:
        args.append(params.b_pad)

    out_p = pl.pallas_call(
        kernel,
        out_shape=jax.ShapeDtypeStruct((Bp, Np), x.dtype),
        grid_spec=pltpu.PrefetchScalarGridSpec(
            num_scalar_prefetch=0,
            grid=grid,
            in_specs=in_specs,
            out_specs=out_specs,
            scratch_shapes=scratch,
        ),
        compiler_params=pltpu.CompilerParams(
            dimension_semantics=dims,
            vmem_limit_bytes=32 * 1024 * 1024,   # within v7x scoped budget
        ),
    )(*args)

    return out_p[:B, :params.out_dim]


def equal_linear(x, weight, bias=None, *, lr_mul=1.0, activation=None):
    """One-shot convenience wrapper (prep + apply)."""
    params = prepare_equal_linear(weight, bias, lr_mul=lr_mul,
                                  activation=activation)
    return equal_linear_apply(params, x)


# ------------------------------- test ---------------------------------------


def _reference(x, weight, bias, lr_mul, activation):
    in_dim = x.shape[1]
    scale = (1.0 / math.sqrt(in_dim)) * lr_mul
    out = jnp.dot(x, (weight * scale).T, precision=jax.lax.Precision.HIGHEST)
    if activation:
        return jnp.where(out >= 0, out, 0.2 * out) * 1.4
    return out + bias * lr_mul


def _check(out, ref, tag):
    assert out.shape == ref.shape, f"{tag}: shape {out.shape} vs {ref.shape}"
    err = jnp.linalg.norm(out - ref) / (jnp.linalg.norm(ref) + 1e-12)
    # Kernel uses default MXU precision; reference uses HIGHEST -> allow a
    # small relative discrepancy while still catching any structural bug.
    assert float(err) < 1e-2, f"{tag}: relative error {float(err):.4e}"


if __name__ == "__main__":
    key = jax.random.PRNGKey(0)

    def run_case(case_id, B, in_dim, out_dim, lr_mul, bias_init):
        kx, kw = jax.random.split(jax.random.fold_in(key, case_id))
        # Deterministic init matching EqualLinear.__init__:
        #   weight = randn(out_dim, in_dim) / lr_mul ; bias = full(out_dim, bias_init)
        weight = jax.random.normal(kw, (out_dim, in_dim), jnp.float32) / lr_mul
        bias = jnp.full((out_dim,), bias_init, jnp.float32)
        x = jax.random.normal(kx, (B, in_dim), jnp.float32)

        # Branch 1: bias path (activation=None)
        p_b = prepare_equal_linear(weight, bias, lr_mul=lr_mul, activation=None)
        out_b = jax.block_until_ready(equal_linear_apply(p_b, x))
        _check(out_b, _reference(x, weight, bias, lr_mul, None),
               f"case{case_id} bias path")

        # Branch 2: activation path ('fused_lrelu', no bias per spec)
        p_a = prepare_equal_linear(weight, None, lr_mul=lr_mul,
                                   activation="fused_lrelu")
        out_a = jax.block_until_ready(equal_linear_apply(p_a, x))
        _check(out_a, _reference(x, weight, bias, lr_mul, "fused_lrelu"),
               f"case{case_id} act path")

    # Small, non-aligned shapes -> padding + single-K + single N tile.
    run_case(0, B=5, in_dim=200, out_dim=72, lr_mul=0.5, bias_init=0.1)
    # Multi N-tile, whole-K single-step path (in_dim <= 2048).
    run_case(1, B=8, in_dim=1152, out_dim=384, lr_mul=1.0, bias_init=0.0)
    # Large in_dim -> multi-step K fallback with f32 accumulator (tk=768, 3 steps).
    run_case(2, B=4, in_dim=2304, out_dim=256, lr_mul=1.0, bias_init=0.05)

    print("KERNEL_OK")
</pallas_src>

<mosaic_0001>
module attributes {stable_mosaic.version = 11 : i64} {
  func.func @_kernel_single_k(%arg0: i32, %arg1: i32, %arg2: memref<8x256xf32, #tpu.memory_space<vmem>>, %arg3: memref<256x128xf32, #tpu.memory_space<vmem>>, %arg4: memref<1x128xf32, #tpu.memory_space<vmem>>, %arg5: memref<8x128xf32, #tpu.memory_space<vmem>>) attributes {dimension_semantics = [#tpu.dimension_semantics<parallel>, #tpu.dimension_semantics<parallel>], iteration_bounds = array<i64: 1, 1>, scalar_prefetch = 0 : i64, scratch_operands = 0 : i64, tpu.core_type = #tpu.core_type<tc>, window_params = [{transform_indices = @transform_0, window_bounds = array<i64: 8, 256>}, {transform_indices = @transform_1, window_bounds = array<i64: 256, 128>}, {transform_indices = @transform_2, window_bounds = array<i64: 1, 128>}, {transform_indices = @transform_3, window_bounds = array<i64: 8, 128>}]} {
    %c0 = arith.constant 0 : index
    %c0_0 = arith.constant 0 : index
    %0 = vector.load %arg2[%c0, %c0_0] : memref<8x256xf32, #tpu.memory_space<vmem>>, vector<8x256xf32>
    %c0_1 = arith.constant 0 : index
    %c0_2 = arith.constant 0 : index
    %1 = vector.load %arg3[%c0_1, %c0_2] : memref<256x128xf32, #tpu.memory_space<vmem>>, vector<256x128xf32>
    %cst = arith.constant dense<0.000000e+00> : vector<8x128xf32>
    %2 = tpu.matmul %0, %1, %cst {dimension_numbers = #tpu.dot_dimension_numbers<[1], [0], [0], [1], [0, 0, 1, 1], [], []>} : vector<8x256xf32>, vector<256x128xf32>, vector<8x128xf32> -> vector<8x128xf32>
    %cst_3 = arith.constant 0.0353553407 : f32
    %3 = vector.broadcast %cst_3 : f32 to vector<8x128xf32>
    %4 = arith.mulf %2, %3 : vector<8x128xf32>
    %c0_4 = arith.constant 0 : index
    %c0_5 = arith.constant 0 : index
    %5 = vector.load %arg4[%c0_4, %c0_5] : memref<1x128xf32, #tpu.memory_space<vmem>>, vector<1x128xf32>
    %cst_6 = arith.constant 5.000000e-01 : f32
    %6 = vector.broadcast %cst_6 : f32 to vector<1x128xf32>
    %7 = arith.mulf %5, %6 : vector<1x128xf32>
    %8 = vector.broadcast %7 : vector<1x128xf32> to vector<8x128xf32>
    %9 = arith.addf %4, %8 : vector<8x128xf32>
    %c0_7 = arith.constant 0 : index
    %c0_8 = arith.constant 0 : index
    %10 = vector.load %arg5[%c0_7, %c0_8] : memref<8x128xf32, #tpu.memory_space<vmem>>, vector<8x128xf32>
    tpu.vector_store %arg5[%c0_7, %c0_8], %9 {strides = array<i32>} : memref<8x128xf32, #tpu.memory_space<vmem>>, vector<8x128xf32>,
    return
  }
  func.func @transform_0(%arg0: i32, %arg1: i32) -> (i32, i32) {
    %c0_i32 = arith.constant 0 : i32
    %c0_i32_0 = arith.constant 0 : i32
    return %arg0, %c0_i32 : i32, i32
  }
  func.func @transform_1(%arg0: i32, %arg1: i32) -> (i32, i32) {
    %c0_i32 = arith.constant 0 : i32
    %c0_i32_0 = arith.constant 0 : i32
    return %c0_i32, %arg1 : i32, i32
  }
  func.func @transform_2(%arg0: i32, %arg1: i32) -> (i32, i32) {
    %c0_i32 = arith.constant 0 : i32
    %c0_i32_0 = arith.constant 0 : i32
    return %c0_i32, %arg1 : i32, i32
  }
  func.func @transform_3(%arg0: i32, %arg1: i32) -> (i32, i32) {
    %c0_i32 = arith.constant 0 : i32
    return %arg0, %arg1 : i32, i32
  }
}

</mosaic_0001>

<bundles_post_ra>
// kernel: tpu_custom_call.1
= control target key start
LH: loop header
LB: loop body
LE: loop exit
PB: predicated region body
PF: predicated region fallthrough
CT: control target
= control target key end

     0   :  { %8 = vsyncpa [#allocation3], 0  ;;  %s265_s0 = inlined_call_operand.hbm [shape: f32[8,256], index: 0, kind: input, shape index: {}]   ;;  %s266_s1 = inlined_call_operand.hbm [shape: f32[256,128], index: 1, kind: input, shape index: {}]   ;;  %s267_s2 = inlined_call_operand.vmem [shape: f32[1,128], index: 2, kind: input, shape index: {}]   ;;  %s268_s3 = inlined_call_operand.hbm [shape: f32[8,128], index: 3, kind: output, shape index: {}]  }
   0x1   :  { %9 = vsyncpa [#allocation6], 0 }
   0x2   :  { %10 = vsyncpa [#allocation4], 0  ;;  %s16_s14 = sshll.u32 %s265_s0, 4  ;;  %s228_s15 = smov [#allocation2]   ;;  %s17_s14 = int_to_ptr.hbm [resolvable:$true] %s16_s14 }
   0x3   :  { %s18_s16 = sshll.u32 %s228_s15, 4  ;;  %s26_s19 = sshll.u32 %s266_s1, 4  ;;  %s19_s16 = int_to_ptr.vmem [resolvable:$true] %s18_s16  ;;  %s27_s19 = int_to_ptr.hbm [resolvable:$true] %s26_s19 }
   0x4   :  { %21 = dma.hbm_to_vmem [thread:$0]  %s17_s14, 256, %s19_s16, [#allocation3]  }
   0x5   :  { %s229_s20 = smov [#allocation5]   ;;  %s230_s22 = smov 128  }
   0x6   :  { %s28_s21 = sshll.u32 %s229_s20, 4  ;;  %s231_s23 = smov 8   ;;  %s29_s21 = int_to_ptr.vmem [resolvable:$true] %s28_s21 }
   0x7   :  { %34 = dma.hbm_to_vmem [thread:$0]  %s27_s19, 4096, %s29_s21, [#allocation6], %s230_s22, %s230_s22, %s231_s23  }
   0x8   :  { %222 = dma.done.wait [#allocation3], 256  }
   0x9   :  { %223 = vsyncadd [#allocation3], 4294967040 }
   0xa   :  { %224 = dma.done.wait [#allocation6], 4096  }
   0xb   :  { %225 = vsyncadd [#allocation6], 4294963200  ;;  %v62_v0 = vld [vmem:[#allocation5 + $0x78] sm:$0xff]  ;;  %v61_v2 = vld [vmem:[#allocation5 + $0x70] sm:$0xff]  ;;  %s232_s24 = smov [#allocation7]   ;;  %s134_s28 = sshll.u32 %s268_s3, 4  ;;  %s135_s28 = int_to_ptr.hbm [resolvable:$true] %s134_s28 }
   0xc   :  { %v78_v1 = vld [vmem:[#allocation5 + $0xf8] sm:$0xff]  ;;  %79 = vmatpush.msra.mxu0 %v62_v0  ;;  %v77_v3 = vld [vmem:[#allocation5 + $0xf0] sm:$0xff]  ;;  %v60_v4 = vld [vmem:[#allocation5 + $0x68] sm:$0xff]  ;;  %s132_s25 = sshll.u32 %s232_s24, 4  ;;  %s133_s25 = int_to_ptr.vmem [resolvable:$true] %s132_s25 }
   0xd   :  { %99 = vmatpush.msra.mxu1 %v78_v1  ;;  %v76_v5 = vld [vmem:[#allocation5 + $0xe8] sm:$0xff]  ;;  %v59_v6 = vld [vmem:[#allocation5 + $0x60] sm:$0xff]  ;;  %v58_v8 = vld [vmem:[#allocation5 + $0x58] sm:$0xff] }
   0xe   :  { %80 = vmatpush.msra.mxu0 %v61_v2  ;;  %v75_v7 = vld [vmem:[#allocation5 + $0xe0] sm:$0xff]  ;;  %v74_v9 = vld [vmem:[#allocation5 + $0xd8] sm:$0xff]  ;;  %v57_v10 = vld [vmem:[#allocation5 + $0x50] sm:$0xff] }
   0xf   :  { %100 = vmatpush.msra.mxu1 %v77_v3  ;;  %v73_v11 = vld [vmem:[#allocation5 + $0xd0] sm:$0xff]  ;;  %v56_v12 = vld [vmem:[#allocation5 + $0x48] sm:$0xff]  ;;  %v55_v14 = vld [vmem:[#allocation5 + $0x40] sm:$0xff] }
  0x10   :  { %81 = vmatpush.msra.mxu0 %v60_v4  ;;  %v72_v13 = vld [vmem:[#allocation5 + $0xc8] sm:$0xff]  ;;  %v71_v15 = vld [vmem:[#allocation5 + $0xc0] sm:$0xff]  ;;  %v54_v16 = vld [vmem:[#allocation5 + $0x38] sm:$0xff] }
  0x11   :  { %101 = vmatpush.msra.mxu1 %v76_v5  ;;  %v70_v17 = vld [vmem:[#allocation5 + $0xb8] sm:$0xff]  ;;  %v53_v18 = vld [vmem:[#allocation5 + $0x30] sm:$0xff]  ;;  %v52_v20 = vld [vmem:[#allocation5 + $0x28] sm:$0xff] }
  0x12   :  { %82 = vmatpush.msra.mxu0 %v59_v6  ;;  %v69_v19 = vld [vmem:[#allocation5 + $0xb0] sm:$0xff]  ;;  %v68_v21 = vld [vmem:[#allocation5 + $0xa8] sm:$0xff]  ;;  %v51_v22 = vld [vmem:[#allocation5 + $0x20] sm:$0xff] }
  0x13   :  { %102 = vmatpush.msra.mxu1 %v75_v7  ;;  %v67_v23 = vld [vmem:[#allocation5 + $0xa0] sm:$0xff]  ;;  %v50_v24 = vld [vmem:[#allocation5 + $0x18] sm:$0xff]  ;;  %v49_v26 = vld [vmem:[#allocation5 + $0x10] sm:$0xff] }
  0x14   :  { %83 = vmatpush.msra.mxu0 %v58_v8  ;;  %v66_v25 = vld [vmem:[#allocation5 + $0x98] sm:$0xff]  ;;  %v65_v27 = vld [vmem:[#allocation5 + $0x90] sm:$0xff]  ;;  %v48_v28 = vld [vmem:[#allocation5 + $0x8] sm:$0xff] }
  0x15   :  { %103 = vmatpush.msra.mxu1 %v74_v9  ;;  %v64_v29 = vld [vmem:[#allocation5 + $0x88] sm:$0xff]  ;;  %v47_v30 = vld [vmem:[#allocation5] sm:$0xff]  ;;  %v45_v32 = vld [vmem:[#allocation2] sm:$0xff] }
  0x16   :  { %84 = vmatpush.msra.mxu0 %v57_v10  ;;  %v63_v31 = vld [vmem:[#allocation5 + $0x80] sm:$0xff]  ;;  %v46_v33 = vld [vmem:[#allocation2 + $0x8] sm:$0xff]  ;;  %v120_v34 = vld [vmem:[%s267_s2] sm:$0x1] }
  0x17   :  { %104 = vmatpush.msra.mxu1 %v73_v11  ;;  %v121_v35 = vmul.f32 0.5, %v120_v34 }
  0x18   :  { %85 = vmatpush.msra.mxu0 %v56_v12 }
  0x19   :  { %105 = vmatpush.msra.mxu1 %v72_v13  ;;  %v123_v39 = vperm.slane %v121_v35, 0 }
  0x1a   :  { %86 = vmatpush.msra.mxu0 %v55_v14 }
  0x1b   :  { %106 = vmatpush.msra.mxu1 %v71_v15 }
  0x1c   :  { %87 = vmatpush.msra.mxu0 %v54_v16 }
  0x1d   :  { %107 = vmatpush.msra.mxu1 %v70_v17 }
  0x1e   :  { %88 = vmatpush.msra.mxu0 %v53_v18 }
  0x1f   :  { %108 = vmatpush.msra.mxu1 %v69_v19 }
  0x20   :  { %89 = vmatpush.msra.mxu0 %v52_v20 }
  0x21   :  { %109 = vmatpush.msra.mxu1 %v68_v21 }
  0x22   :  { %90 = vmatpush.msra.mxu0 %v51_v22 }
  0x23   :  { %110 = vmatpush.msra.mxu1 %v67_v23 }
  0x24   :  { %91 = vmatpush.msra.mxu0 %v50_v24 }
  0x25   :  { %111 = vmatpush.msra.mxu1 %v66_v25 }
  0x26   :  { %92 = vmatpush.msra.mxu0 %v49_v26 }
  0x27   :  { %112 = vmatpush.msra.mxu1 %v65_v27 }
  0x28   :  { %93 = vmatpush.msra.mxu0 %v48_v28 }
  0x29   :  { %113 = vmatpush.msra.mxu1 %v64_v29 }
  0x2a   :  { %94 = vmatpush.msra.mxu0 %v47_v30 }
  0x2b   :  { %114 = vmatpush.msra.mxu1 %v63_v31  ;;  %95 = vmatmul.f32.vlgmr.msra.gmra.mxu0 %v45_v32 }
  0x2c   :  { %115 = vmatmul.f32.vlgmr.msra.gmra.mxu1 %v46_v33 }
  0xa8   :  { %v96_v36 = vpop.f32.mrf.mxu0 }
  0xa9   :  { %v116_v37 = vpop.f32.mrf.mxu1 }
  0xaa   :  { %v117_v38 = vadd.f32 %v116_v37, %v96_v36 }
  0xac   :  { %v119_v40 = vmul.f32 0.03535534, %v117_v38 }
  0xae   :  { %v125_v41 = vadd.f32 %v123_v39, %v119_v40 }
  0xb0   :  { %126 = vst [vmem:[#allocation7] sm:$0xff] %v125_v41 }
  0xb1   :  { %137 = dma.vmem_to_hbm [thread:$0]  %s133_s25, 128, %s135_s28, [#allocation4]  }
  0xb2   :  { %226 = dma.done.wait [#allocation4], 128  }
  0xb3   :  { %227 = vsyncadd [#allocation4], 4294967168 }
  0xb4   :  { %142 = vsyncpa [#allocation3], 1 }
  0xb5   :  { %143 = vsyncpa [#allocation6], 1 }
  0xb6   :  { %144 = vsyncpa [#allocation4], 1 }

</bundles_post_ra>
